<compile_context>
chip_gen: v7x
topology: tpu7x:2x2x1
jax: 0.10.0
libtpu: 0.0.40
codegen_flags: <defaults>
</compile_context>

<pallas_src>
import jax
import jax.numpy as jnp
from jax.experimental import pallas as pl
from jax.experimental.pallas import tpu as pltpu

IN = 5
OUT = 3


def linear_add_relu_kernel(x_ref, wb_ref, o_ref):
    # x_ref: (B, IN)  wb_ref: (IN+1, OUT)  [rows 0..IN-1 = W^T, row IN = b + 1]
    # o_ref: (B, OUT)
    x = x_ref[...]
    wb = wb_ref[...]

    # Unrolled VPU multiply-accumulate over IN (compile-time constant trip
    # count). Each term is (B,1) * (1,OUT) -> (B,OUT); no cross-lane/sublane
    # traffic and no rank-3 intermediate.
    y = x[:, 0:1] * wb[0:1, :]
    for k in range(1, IN):
        y = y + x[:, k : k + 1] * wb[k : k + 1, :]

    # Bias (+1 already folded in offline), broadcast over batch rows.
    y = y + wb[IN : IN + 1, :]

    o_ref[...] = jnp.maximum(y, 0.0).astype(o_ref.dtype)


def model_forward(x, wb):
    """x: (B, IN) f32; wb: (IN+1, OUT) f32 with wb[:IN]=W^T, wb[IN]=b+1."""
    B = x.shape[0]
    out = wb.shape[1]
    bytes_accessed = (x.size + wb.size + B * out) * 4
    return pl.pallas_call(
        linear_add_relu_kernel,
        out_shape=jax.ShapeDtypeStruct((B, out), jnp.float32),
        # No grid: whole arrays in VMEM, single invocation, no pipelining.
        in_specs=[
            pl.BlockSpec(memory_space=pltpu.MemorySpace.VMEM),
            pl.BlockSpec(memory_space=pltpu.MemorySpace.VMEM),
        ],
        out_specs=pl.BlockSpec(memory_space=pltpu.MemorySpace.VMEM),
        cost_estimate=pl.CostEstimate(
            flops=2 * B * IN * out,
            transcendentals=0,
            bytes_accessed=bytes_accessed,
        ),
    )(x, wb)


# TODO(synk): at this size a plain fused XLA expression (relu(x @ W.T + b + 1))
# avoids the custom-call boundary entirely; keep Pallas only if this body gets
# fused into a larger kernel or batched (then: 1-D grid over B with 512-1024
# row tiles, lane-dense / 128-padded output, parallel axis for v7x megacore).


if __name__ == "__main__":
    key = jax.random.PRNGKey(0)
    kx, kw, kb = jax.random.split(key, 3)

    # Input matching the module: x1 = torch.randn(1, 5)
    x1 = jax.random.normal(kx, (1, IN), dtype=jnp.float32)

    # Deterministic Linear(5, 3) params (PyTorch-style uniform(-1/sqrt(5), 1/sqrt(5)))
    bound = 1.0 / jnp.sqrt(5.0)
    weight = jax.random.uniform(kw, (OUT, IN), minval=-bound, maxval=bound, dtype=jnp.float32)
    bias = jax.random.uniform(kb, (OUT,), minval=-bound, maxval=bound, dtype=jnp.float32)

    # Offline packing (done ONCE, outside the per-call path):
    #   rows 0..IN-1 : W^T  (IN, OUT)
    #   row  IN      : bias + 1.0   (the "+ ones" is folded here)
    wb = jnp.concatenate([weight.T, (bias + 1.0).reshape(1, OUT)], axis=0)  # (IN+1, OUT)

    fwd = jax.jit(model_forward)
    out = fwd(x1, wb)
    jax.block_until_ready(out)

    # Reference check in plain JAX
    ref = jnp.maximum(x1 @ weight.T + bias + 1.0, 0.0)
    assert out.shape == (1, OUT)
    assert jnp.allclose(out, ref, atol=1e-5), (out, ref)

    print("KERNEL_OK")
</pallas_src>

<mosaic_0001>
module attributes {stable_mosaic.version = 11 : i64} {
  func.func @linear_add_relu_kernel(%arg0: memref<1x5xf32, #tpu.memory_space<vmem>>, %arg1: memref<6x3xf32, #tpu.memory_space<vmem>>, %arg2: memref<1x3xf32, #tpu.memory_space<vmem>>) attributes {dimension_semantics = [], scalar_prefetch = 0 : i64, scratch_operands = 0 : i64, tpu.core_type = #tpu.core_type<tc>} {
    %c0 = arith.constant 0 : index
    %c0_0 = arith.constant 0 : index
    %0 = vector.load %arg0[%c0, %c0_0] : memref<1x5xf32, #tpu.memory_space<vmem>>, vector<1x5xf32>
    %c0_1 = arith.constant 0 : index
    %c0_2 = arith.constant 0 : index
    %1 = vector.load %arg1[%c0_1, %c0_2] : memref<6x3xf32, #tpu.memory_space<vmem>>, vector<6x3xf32>
    %2 = vector.extract_strided_slice %0 {offsets = [0, 0], sizes = [1, 1], strides = [1, 1]} : vector<1x5xf32> to vector<1x1xf32>
    %3 = vector.extract_strided_slice %1 {offsets = [0, 0], sizes = [1, 3], strides = [1, 1]} : vector<6x3xf32> to vector<1x3xf32>
    %4 = vector.broadcast %2 : vector<1x1xf32> to vector<1x3xf32>
    %5 = arith.mulf %4, %3 : vector<1x3xf32>
    %6 = vector.extract_strided_slice %0 {offsets = [0, 1], sizes = [1, 1], strides = [1, 1]} : vector<1x5xf32> to vector<1x1xf32>
    %7 = vector.extract_strided_slice %1 {offsets = [1, 0], sizes = [1, 3], strides = [1, 1]} : vector<6x3xf32> to vector<1x3xf32>
    %8 = vector.broadcast %6 : vector<1x1xf32> to vector<1x3xf32>
    %9 = arith.mulf %8, %7 : vector<1x3xf32>
    %10 = arith.addf %5, %9 : vector<1x3xf32>
    %11 = vector.extract_strided_slice %0 {offsets = [0, 2], sizes = [1, 1], strides = [1, 1]} : vector<1x5xf32> to vector<1x1xf32>
    %12 = vector.extract_strided_slice %1 {offsets = [2, 0], sizes = [1, 3], strides = [1, 1]} : vector<6x3xf32> to vector<1x3xf32>
    %13 = vector.broadcast %11 : vector<1x1xf32> to vector<1x3xf32>
    %14 = arith.mulf %13, %12 : vector<1x3xf32>
    %15 = arith.addf %10, %14 : vector<1x3xf32>
    %16 = vector.extract_strided_slice %0 {offsets = [0, 3], sizes = [1, 1], strides = [1, 1]} : vector<1x5xf32> to vector<1x1xf32>
    %17 = vector.extract_strided_slice %1 {offsets = [3, 0], sizes = [1, 3], strides = [1, 1]} : vector<6x3xf32> to vector<1x3xf32>
    %18 = vector.broadcast %16 : vector<1x1xf32> to vector<1x3xf32>
    %19 = arith.mulf %18, %17 : vector<1x3xf32>
    %20 = arith.addf %15, %19 : vector<1x3xf32>
    %21 = vector.extract_strided_slice %0 {offsets = [0, 4], sizes = [1, 1], strides = [1, 1]} : vector<1x5xf32> to vector<1x1xf32>
    %22 = vector.extract_strided_slice %1 {offsets = [4, 0], sizes = [1, 3], strides = [1, 1]} : vector<6x3xf32> to vector<1x3xf32>
    %23 = vector.broadcast %21 : vector<1x1xf32> to vector<1x3xf32>
    %24 = arith.mulf %23, %22 : vector<1x3xf32>
    %25 = arith.addf %20, %24 : vector<1x3xf32>
    %26 = vector.extract_strided_slice %1 {offsets = [5, 0], sizes = [1, 3], strides = [1, 1]} : vector<6x3xf32> to vector<1x3xf32>
    %27 = arith.addf %25, %26 : vector<1x3xf32>
    %cst = arith.constant 0.000000e+00 : f32
    %28 = vector.broadcast %cst : f32 to vector<1x3xf32>
    %29 = arith.maximumf %27, %28 : vector<1x3xf32>
    %c0_3 = arith.constant 0 : index
    %c0_4 = arith.constant 0 : index
    %30 = vector.load %arg2[%c0_3, %c0_4] : memref<1x3xf32, #tpu.memory_space<vmem>>, vector<1x3xf32>
    tpu.vector_store %arg2[%c0_3, %c0_4], %29 {strides = array<i32>} : memref<1x3xf32, #tpu.memory_space<vmem>>, vector<1x3xf32>,
    return
  }
}

</mosaic_0001>

<bundles_post_ra>
// kernel: model_forward.1
= control target key start
LH: loop header
LB: loop body
LE: loop exit
PB: predicated region body
PF: predicated region fallthrough
CT: control target
= control target key end

     0   :  { %v133_v1 = vmov 2   ;;  %v134_v2 = vmov 1   ;;  %s172_s0 = inlined_call_operand.vmem [shape: f32[1,5], index: 0, kind: input, shape index: {}]   ;;  %s173_s1 = inlined_call_operand.vmem [shape: f32[6,3], index: 1, kind: input, shape index: {}]   ;;  %s174_s2 = inlined_call_operand.hbm [shape: f32[1,3], index: 2, kind: output, shape index: {}]  }
   0x1   :  { %v12_v0 = vld [vmem:[%s172_s0] sm:$0x1]  ;;  %105 = vset.pattern.permute.xlu1 %v133_v1  ;;  %103 = vset.pattern.permute.xlu0 %v134_v2 }
   0x2   :  { %7 = vsyncpa [#allocation3], 0  ;;  %38 = vperm.xlu1 %105, %v12_v0   ;;  %25 = vperm.xlu0 %103, %v12_v0   ;;  %v135_v3 = vmov 3   ;;  %v136_v4 = vmov 0   ;;  %v137_v5 = vmov 4   ;;  %v19_v6 = vlaneseq }
   0x3   :  { %v13_v11 = vld [vmem:[%s173_s1] sm:$0x3f]  ;;  %s138_s1 = smov [#allocation2]   ;;  %vm81_vm0 = vcmask 16384  }
   0x4   :  { %v20_v7 = vshrl.u32 %v19_v6, 7  ;;  %v77_v32 = vrot.slane %v13_v11, 5  ;;  %s89_s12 = sshll.u32 %s138_s1, 4  ;;  %s90_s12 = int_to_ptr.vmem [resolvable:$true] %s89_s12 }
   0x5   :  { %s109_s13 = scalar_lea.vmem %s90_s12, 16  ;;  %s113_s14 = scalar_lea.vmem %s90_s12, 32 }
   0x6   :  { %106 = vset.pattern.permute.xlu1 %v135_v3  ;;  %104 = vset.pattern.permute.xlu0 %v136_v4  ;;  %v21_v8 = vsub.s32 0, %v20_v7  ;;  %p110_p0 = scmp.ne.s32.totalorder %s90_s12, %s109_s13  ;;  %p114_p1 = scmp.lt.s32.totalorder %s90_s12, %s90_s12 }
   0x7   :  { %51 = vperm.xlu1 %106, %v12_v0   ;;  %16 = vperm.xlu0 %104, %v12_v0   ;;  %p115_p2 = scmp.lt.s32.totalorder %s113_s14, %s109_s13 }
   0x9   :  { %p116_p3 = por %p115_p2, %p114_p1 }
   0xb   :  { %107 = vset.pattern.permute.xlu1 %v137_v5  ;;  %108 = vset.pattern.permute.xlu0 %v137_v5  ;;  %p117_p4 = pnand %p116_p3, %p110_p0 }
   0xc   :  { %64 = vperm.xlu1 %107, %v12_v0  }
  0x81   :  { %v39_v9 = vpop.permute.xlu1 %38  ;;  %v26_v10 = vpop.permute.xlu0 %25 }
  0x82   :  { %v31_v12 = vrot.slane %v26_v10, %v21_v8  ;;  %v44_v13 = vrot.slane %v39_v9, %v21_v8 }
  0x84   :  { %v32_v14 = vmul.f32 %v31_v12, %v13_v11  ;;  %v45_v17 = vmul.f32 %v44_v13, %v13_v11 }
  0x86   :  { %v52_v15 = vpop.permute.xlu1 %51  ;;  %v17_v16 = vpop.permute.xlu0 %16  ;;  %v34_v20 = vrot.slane %v32_v14, 1  ;;  %v47_v23 = vrot.slane %v45_v17, 2 }
  0x87   :  { %v57_v18 = vrot.slane %v52_v15, %v21_v8  ;;  %v22_v19 = vrot.slane %v17_v16, %v21_v8 }
  0x89   :  { %v58_v21 = vmul.f32 %v57_v18, %v13_v11  ;;  %v23_v22 = vmul.f32 %v22_v19, %v13_v11 }
  0x8b   :  { %v36_v24 = vadd.f32 %v34_v20, %v23_v22  ;;  %v65_v25 = vpop.permute.xlu1 %64  ;;  %v60_v27 = vrot.slane %v58_v21, 3 }
  0x8c   :  { %v70_v26 = vrot.slane %v65_v25, %v21_v8 }
  0x8d   :  { %v49_v28 = vadd.f32 %v47_v23, %v36_v24 }
  0x8e   :  { %v71_v29 = vmul.f32 %v70_v26, %v13_v11 }
  0x8f   :  { %v62_v30 = vadd.f32 %v60_v27, %v49_v28 }
  0x90   :  { %v73_v31 = vrot.slane %v71_v29, 4 }
  0x92   :  { %v75_v33 = vadd.f32 %v73_v31, %v62_v30 }
  0x94   :  { %v79_v34 = vadd.f32 %v77_v32, %v75_v33 }
  0x96   :  { %v80_v35 = vmax.f32 %v79_v34, 0.0 }
  0x98   :  { %82 = vst.msk [vmem:[#allocation2] sm:$0x1] %vm81_vm0, %v80_v35 }
  0x99   :  { %120 = shalt.err (!%p117_p4)
}
  0x9a   :  { %s121_s17 = scalar_lea.hbm %s174_s2, 16 }
  0x9b   :  { %p122_p5 = scmp.ne.s32.totalorder %s174_s2, %s121_s17  ;;  %p125_p6 = scmp.lt.u32.totalorder %s121_s17, %s174_s2 }
  0x9d   :  { %p127_p7 = pnand %p125_p6, %p122_p5 }
  0x9f   :  { %130 = shalt.err (!%p127_p7)
}
  0xa0   :  { %92 = dma.vmem_to_hbm [thread:$0]  %s90_s12, 16, %s174_s2, [#allocation3]  }
  0xa1   :  { %131 = dma.done.wait [#allocation3], 16  }
  0xa2   :  { %132 = vsyncadd [#allocation3], 4294967280 }
  0xa3   :  { %96 = vsyncpa [#allocation3], 1 }

</bundles_post_ra>
